<compile_context>
chip_gen: v7x
topology: tpu7x:2x2x1
jax: 0.10.0
libtpu: 0.0.40
codegen_flags: <defaults>
</compile_context>

<pallas_src>
import jax
import jax.numpy as jnp
from jax.experimental import pallas as pl
from jax.experimental.pallas import tpu as pltpu


def rectified_flow_kernel(
    t_ref,                                   # (1, NT)  per-column time
    x1_ref, x0_ref, cond_ref,                # (C, NT)  lane-dense blocks
    w1a_ref, w1b_ref, b1_ref, tw_ref,        # model params (full arrays)
    w2_ref, b2_ref,
    out_ref,                                 # (1, 1, 128) partial-sum block
):
    t = t_ref[...]                           # (1, NT)
    x1 = x1_ref[...]                         # (C, NT)
    x0 = x0_ref[...]
    cond = cond_ref[...]

    # sample_x_t: x_t = t * x_1 + (1 - t) * x_0   (t broadcasts over channels)
    x_t = t * x1 + (1.0 - t) * x0

    # model(cat([x_t, cond], dim=1), t)  ==  W1a @ x_t + W1b @ cond + b1 + t*tw
    # (two dots instead of a sublane concat + one dot; K=4 each, negligible)
    h = (jnp.dot(w1a_ref[...], x_t, preferred_element_type=jnp.float32)
         + jnp.dot(w1b_ref[...], cond, preferred_element_type=jnp.float32)
         + b1_ref[...]                       # (HID, 1) -> lane broadcast
         + tw_ref[...] * t)                  # (HID, 1) * (1, NT) -> (HID, NT)
    h = h * jax.nn.sigmoid(h)                # SiLU
    v_pred = (jnp.dot(w2_ref[...], h, preferred_element_type=jnp.float32)
              + b2_ref[...])                 # (C, NT)

    # partial MSE numerator for this lane tile: sum((x1 - x0 - v_pred)^2)
    diff = (x1 - x0) - v_pred
    sq = jnp.sum(diff * diff)
    out_ref[...] = jnp.broadcast_to(sq, (1, 1, 128)).astype(jnp.float32)


def _nchw_to_cn(x):
    """[B, C, H, W] -> [C, B*H*W]: channels on sublanes, pixels on lanes."""
    b, c, h, w = x.shape
    return jnp.transpose(x, (1, 0, 2, 3)).reshape(c, b * h * w)


def _choose_lane_tile(n):
    """Largest lane tile (multiple of 128, divides n, <= 2048) preferring >=2
    tiles so the "parallel" grid axis can be split across v7x's 2 TensorCores;
    the 2048 cap keeps double-buffered blocks small even on v7x's 64 MiB VMEM."""
    divisors = [c for c in (2048, 1024, 512, 256, 128) if n % c == 0]
    if not divisors:
        return n
    for c in divisors:               # descending
        if n // c >= 2:
            return c
    return divisors[0]


def rectified_flow_loss(x1_nchw, cond_nchw, x0_nchw, t, params):
    """Scalar MSE loss  mean((x1 - x0 - model(cat(x_t,cond), t))^2)."""
    w1a, w1b, b1, tw, w2, b2 = params
    B, C, H, W = x1_nchw.shape
    P = H * W
    N = B * P                                 # batch folded into the lane axis
    HID = w1a.shape[0]
    assert N % 128 == 0, "B*H*W must be a multiple of 128 (lane axis)"

    ntile = _choose_lane_tile(N)
    num_tiles = N // ntile

    x1_f = _nchw_to_cn(x1_nchw)
    x0_f = _nchw_to_cn(x0_nchw)
    cond_f = _nchw_to_cn(cond_nchw)
    # per-column time: column b*P + p carries t[b]
    t_cols = jnp.repeat(t.astype(jnp.float32), P)[None, :]       # (1, N)

    def full_spec(shape):
        return pl.BlockSpec(shape, lambda i: (0, 0))

    per_tile = pl.pallas_call(
        rectified_flow_kernel,
        grid=(num_tiles,),
        in_specs=[
            pl.BlockSpec((1, ntile), lambda i: (0, i)),   # t per column
            pl.BlockSpec((C, ntile), lambda i: (0, i)),   # x1
            pl.BlockSpec((C, ntile), lambda i: (0, i)),   # x0
            pl.BlockSpec((C, ntile), lambda i: (0, i)),   # cond
            full_spec((HID, C)),                          # W1a
            full_spec((HID, C)),                          # W1b
            full_spec((HID, 1)),                          # b1
            full_spec((HID, 1)),                          # time embed
            full_spec((C, HID)),                          # W2
            full_spec((C, 1)),                            # b2
        ],
        out_specs=pl.BlockSpec((1, 1, 128), lambda i: (i, 0, 0)),
        out_shape=jax.ShapeDtypeStruct((num_tiles, 1, 128), jnp.float32),
        compiler_params=pltpu.CompilerParams(
            dimension_semantics=("parallel",)),           # v7x: 2 TCs can split
    )(t_cols, x1_f, x0_f, cond_f, w1a, w1b, b1, tw, w2, b2)

    # F.mse_loss default reduction='mean' over all elements of [B, C, H, W].
    return per_tile[:, 0, 0].sum() / (B * C * H * W)


def rectified_flow_loss_ref(x1, cond, x0, t, params):
    """Pure-JAX reference implementing the same forward semantics."""
    w1a, w1b, b1, tw, w2, b2 = params
    B, C, H, W = x1.shape
    P = H * W
    t4 = t[:, None, None, None]
    x_t = t4 * x1 + (1.0 - t4) * x0

    def flat(a):
        return a.reshape(B, C, P)

    h = (jnp.einsum('hc,bcp->bhp', w1a, flat(x_t))
         + jnp.einsum('hc,bcp->bhp', w1b, flat(cond))
         + b1[None]                              # (1, HID, 1)
         + t[:, None, None] * tw[None])          # (B, HID, 1)
    h = h * jax.nn.sigmoid(h)
    v = jnp.einsum('ch,bhp->bcp', w2, h) + b2[None]
    diff = flat(x1) - flat(x0) - v
    return jnp.mean(diff * diff)


if __name__ == "__main__":
    B, C, H, W = 2, 4, 16, 16
    HID = 32

    key = jax.random.PRNGKey(0)
    (k_x1, k_cond, k_t, k_x0,
     k_w1a, k_w1b, k_tw, k_w2) = jax.random.split(key, 8)

    # external inputs
    x1 = jax.random.normal(k_x1, (B, C, H, W), jnp.float32)
    cond = jax.random.normal(k_cond, (B, C, H, W), jnp.float32)

    # forward-pass randomness (same semantics as the PyTorch module):
    #   t_half = sigmoid(randn(B//2)); t = cat([t_half, 1 - t_half]); x_0 = randn_like(x_1)
    t_half = jax.nn.sigmoid(jax.random.normal(k_t, (B // 2,), jnp.float32))
    t = jnp.concatenate([t_half, 1.0 - t_half], axis=0)
    x0 = jax.random.normal(k_x0, (B, C, H, W), jnp.float32)

    # deterministic synthetic model parameters (channels-first weights)
    w1a = 0.1 * jax.random.normal(k_w1a, (HID, C), jnp.float32)
    w1b = 0.1 * jax.random.normal(k_w1b, (HID, C), jnp.float32)
    b1 = jnp.zeros((HID, 1), jnp.float32)
    tw = 0.1 * jax.random.normal(k_tw, (HID, 1), jnp.float32)
    w2 = 0.1 * jax.random.normal(k_w2, (C, HID), jnp.float32)
    b2 = jnp.zeros((C, 1), jnp.float32)
    params = (w1a, w1b, b1, tw, w2, b2)

    loss = rectified_flow_loss(x1, cond, x0, t, params)
    loss = jax.block_until_ready(loss)

    ref = jax.block_until_ready(rectified_flow_loss_ref(x1, cond, x0, t, params))
    assert jnp.isfinite(loss), "loss is not finite"
    assert abs(float(loss) - float(ref)) <= 1e-4 * max(1.0, abs(float(ref))), \
        f"mismatch: pallas={float(loss)} ref={float(ref)}"

    print("KERNEL_OK")
</pallas_src>

<mosaic_0001>
module attributes {stable_mosaic.version = 11 : i64} {
  func.func @rectified_flow_kernel(%arg0: i32, %arg1: memref<1x256xf32, #tpu.memory_space<vmem>>, %arg2: memref<4x256xf32, #tpu.memory_space<vmem>>, %arg3: memref<4x256xf32, #tpu.memory_space<vmem>>, %arg4: memref<4x256xf32, #tpu.memory_space<vmem>>, %arg5: memref<32x4xf32, #tpu.memory_space<vmem>>, %arg6: memref<32x4xf32, #tpu.memory_space<vmem>>, %arg7: memref<32x1xf32, #tpu.memory_space<vmem>>, %arg8: memref<32x1xf32, #tpu.memory_space<vmem>>, %arg9: memref<4x32xf32, #tpu.memory_space<vmem>>, %arg10: memref<4x1xf32, #tpu.memory_space<vmem>>, %arg11: memref<1x1x128xf32, #tpu.memory_space<vmem>>) attributes {dimension_semantics = [#tpu.dimension_semantics<parallel>], iteration_bounds = array<i64: 2>, scalar_prefetch = 0 : i64, scratch_operands = 0 : i64, tpu.core_type = #tpu.core_type<tc>, window_params = [{transform_indices = @transform_0, window_bounds = array<i64: 1, 256>}, {transform_indices = @transform_1, window_bounds = array<i64: 4, 256>}, {transform_indices = @transform_2, window_bounds = array<i64: 4, 256>}, {transform_indices = @transform_3, window_bounds = array<i64: 4, 256>}, {pipeline_mode = #tpu.pipeline_mode<synchronous>, transform_indices = @transform_4, window_bounds = array<i64: 32, 4>}, {pipeline_mode = #tpu.pipeline_mode<synchronous>, transform_indices = @transform_5, window_bounds = array<i64: 32, 4>}, {pipeline_mode = #tpu.pipeline_mode<synchronous>, transform_indices = @transform_6, window_bounds = array<i64: 32, 1>}, {pipeline_mode = #tpu.pipeline_mode<synchronous>, transform_indices = @transform_7, window_bounds = array<i64: 32, 1>}, {pipeline_mode = #tpu.pipeline_mode<synchronous>, transform_indices = @transform_8, window_bounds = array<i64: 4, 32>}, {pipeline_mode = #tpu.pipeline_mode<synchronous>, transform_indices = @transform_9, window_bounds = array<i64: 4, 1>}, {transform_indices = @transform_10, window_bounds = array<i64: 1, 1, 128>}]} {
    %c0 = arith.constant 0 : index
    %c0_0 = arith.constant 0 : index
    %0 = vector.load %arg1[%c0, %c0_0] : memref<1x256xf32, #tpu.memory_space<vmem>>, vector<1x256xf32>
    %c0_1 = arith.constant 0 : index
    %c0_2 = arith.constant 0 : index
    %1 = vector.load %arg2[%c0_1, %c0_2] : memref<4x256xf32, #tpu.memory_space<vmem>>, vector<4x256xf32>
    %c0_3 = arith.constant 0 : index
    %c0_4 = arith.constant 0 : index
    %2 = vector.load %arg3[%c0_3, %c0_4] : memref<4x256xf32, #tpu.memory_space<vmem>>, vector<4x256xf32>
    %c0_5 = arith.constant 0 : index
    %c0_6 = arith.constant 0 : index
    %3 = vector.load %arg4[%c0_5, %c0_6] : memref<4x256xf32, #tpu.memory_space<vmem>>, vector<4x256xf32>
    %4 = vector.broadcast %0 : vector<1x256xf32> to vector<4x256xf32>
    %5 = arith.mulf %4, %1 : vector<4x256xf32>
    %cst = arith.constant 1.000000e+00 : f32
    %6 = vector.broadcast %cst : f32 to vector<1x256xf32>
    %7 = arith.subf %6, %0 : vector<1x256xf32>
    %8 = vector.broadcast %7 : vector<1x256xf32> to vector<4x256xf32>
    %9 = arith.mulf %8, %2 : vector<4x256xf32>
    %10 = arith.addf %5, %9 : vector<4x256xf32>
    %c0_7 = arith.constant 0 : index
    %c0_8 = arith.constant 0 : index
    %11 = vector.load %arg5[%c0_7, %c0_8] : memref<32x4xf32, #tpu.memory_space<vmem>>, vector<32x4xf32>
    %cst_9 = arith.constant dense<0.000000e+00> : vector<32x256xf32>
    %12 = tpu.matmul %11, %10, %cst_9 {dimension_numbers = #tpu.dot_dimension_numbers<[1], [0], [0], [1], [0, 0, 1, 1], [], []>} : vector<32x4xf32>, vector<4x256xf32>, vector<32x256xf32> -> vector<32x256xf32>
    %c0_10 = arith.constant 0 : index
    %c0_11 = arith.constant 0 : index
    %13 = vector.load %arg6[%c0_10, %c0_11] : memref<32x4xf32, #tpu.memory_space<vmem>>, vector<32x4xf32>
    %cst_12 = arith.constant dense<0.000000e+00> : vector<32x256xf32>
    %14 = tpu.matmul %13, %3, %cst_12 {dimension_numbers = #tpu.dot_dimension_numbers<[1], [0], [0], [1], [0, 0, 1, 1], [], []>} : vector<32x4xf32>, vector<4x256xf32>, vector<32x256xf32> -> vector<32x256xf32>
    %15 = arith.addf %12, %14 : vector<32x256xf32>
    %c0_13 = arith.constant 0 : index
    %c0_14 = arith.constant 0 : index
    %16 = vector.load %arg7[%c0_13, %c0_14] : memref<32x1xf32, #tpu.memory_space<vmem>>, vector<32x1xf32>
    %17 = vector.broadcast %16 : vector<32x1xf32> to vector<32x256xf32>
    %18 = arith.addf %15, %17 : vector<32x256xf32>
    %c0_15 = arith.constant 0 : index
    %c0_16 = arith.constant 0 : index
    %19 = vector.load %arg8[%c0_15, %c0_16] : memref<32x1xf32, #tpu.memory_space<vmem>>, vector<32x1xf32>
    %20 = vector.broadcast %19 : vector<32x1xf32> to vector<32x256xf32>
    %21 = vector.broadcast %0 : vector<1x256xf32> to vector<32x256xf32>
    %22 = arith.mulf %20, %21 : vector<32x256xf32>
    %23 = arith.addf %18, %22 : vector<32x256xf32>
    %24 = arith.negf %23 : vector<32x256xf32>
    %25 = math.exp %24 : vector<32x256xf32>
    %cst_17 = arith.constant 1.000000e+00 : f32
    %26 = vector.broadcast %cst_17 : f32 to vector<32x256xf32>
    %27 = arith.addf %26, %25 : vector<32x256xf32>
    %28 = arith.divf %26, %27 : vector<32x256xf32>
    %29 = arith.mulf %23, %28 : vector<32x256xf32>
    %c0_18 = arith.constant 0 : index
    %c0_19 = arith.constant 0 : index
    %30 = vector.load %arg9[%c0_18, %c0_19] : memref<4x32xf32, #tpu.memory_space<vmem>>, vector<4x32xf32>
    %cst_20 = arith.constant dense<0.000000e+00> : vector<4x256xf32>
    %31 = tpu.matmul %30, %29, %cst_20 {dimension_numbers = #tpu.dot_dimension_numbers<[1], [0], [0], [1], [0, 0, 1, 1], [], []>} : vector<4x32xf32>, vector<32x256xf32>, vector<4x256xf32> -> vector<4x256xf32>
    %c0_21 = arith.constant 0 : index
    %c0_22 = arith.constant 0 : index
    %32 = vector.load %arg10[%c0_21, %c0_22] : memref<4x1xf32, #tpu.memory_space<vmem>>, vector<4x1xf32>
    %33 = vector.broadcast %32 : vector<4x1xf32> to vector<4x256xf32>
    %34 = arith.addf %31, %33 : vector<4x256xf32>
    %35 = arith.subf %1, %2 : vector<4x256xf32>
    %36 = arith.subf %35, %34 : vector<4x256xf32>
    %37 = arith.mulf %36, %36 : vector<4x256xf32>
    %38 = vector.shape_cast %37 : vector<4x256xf32> to vector<1x4x256xf32>
    %cst_23 = arith.constant dense<0.000000e+00> : vector<1xf32>
    %39 = vector.multi_reduction <add>, %38, %cst_23 [1, 2] : vector<1x4x256xf32> to vector<1xf32>
    %40 = vector.shape_cast %39 : vector<1xf32> to vector<1x1x1xf32>
    %41 = vector.extract %40[0, 0, 0] : f32 from vector<1x1x1xf32>
    %42 = vector.broadcast %41 : f32 to vector<1x1x128xf32>
    %c0_24 = arith.constant 0 : index
    %c0_25 = arith.constant 0 : index
    %c0_26 = arith.constant 0 : index
    %43 = vector.load %arg11[%c0_24, %c0_25, %c0_26] : memref<1x1x128xf32, #tpu.memory_space<vmem>>, vector<1x1x128xf32>
    tpu.vector_store %arg11[%c0_24, %c0_25, %c0_26], %42 {strides = array<i32>} : memref<1x1x128xf32, #tpu.memory_space<vmem>>, vector<1x1x128xf32>,
    return
  }
  func.func @transform_0(%arg0: i32) -> (i32, i32) {
    %c0_i32 = arith.constant 0 : i32
    %c0_i32_0 = arith.constant 0 : i32
    return %c0_i32, %arg0 : i32, i32
  }
  func.func @transform_1(%arg0: i32) -> (i32, i32) {
    %c0_i32 = arith.constant 0 : i32
    %c0_i32_0 = arith.constant 0 : i32
    return %c0_i32, %arg0 : i32, i32
  }
  func.func @transform_2(%arg0: i32) -> (i32, i32) {
    %c0_i32 = arith.constant 0 : i32
    %c0_i32_0 = arith.constant 0 : i32
    return %c0_i32, %arg0 : i32, i32
  }
  func.func @transform_3(%arg0: i32) -> (i32, i32) {
    %c0_i32 = arith.constant 0 : i32
    %c0_i32_0 = arith.constant 0 : i32
    return %c0_i32, %arg0 : i32, i32
  }
  func.func @transform_4(%arg0: i32) -> (i32, i32) {
    %c0_i32 = arith.constant 0 : i32
    %c0_i32_0 = arith.constant 0 : i32
    %c0_i32_1 = arith.constant 0 : i32
    return %c0_i32, %c0_i32_0 : i32, i32
  }
  func.func @transform_5(%arg0: i32) -> (i32, i32) {
    %c0_i32 = arith.constant 0 : i32
    %c0_i32_0 = arith.constant 0 : i32
    %c0_i32_1 = arith.constant 0 : i32
    return %c0_i32, %c0_i32_0 : i32, i32
  }
  func.func @transform_6(%arg0: i32) -> (i32, i32) {
    %c0_i32 = arith.constant 0 : i32
    %c0_i32_0 = arith.constant 0 : i32
    %c0_i32_1 = arith.constant 0 : i32
    return %c0_i32, %c0_i32_0 : i32, i32
  }
  func.func @transform_7(%arg0: i32) -> (i32, i32) {
    %c0_i32 = arith.constant 0 : i32
    %c0_i32_0 = arith.constant 0 : i32
    %c0_i32_1 = arith.constant 0 : i32
    return %c0_i32, %c0_i32_0 : i32, i32
  }
  func.func @transform_8(%arg0: i32) -> (i32, i32) {
    %c0_i32 = arith.constant 0 : i32
    %c0_i32_0 = arith.constant 0 : i32
    %c0_i32_1 = arith.constant 0 : i32
    return %c0_i32, %c0_i32_0 : i32, i32
  }
  func.func @transform_9(%arg0: i32) -> (i32, i32) {
    %c0_i32 = arith.constant 0 : i32
    %c0_i32_0 = arith.constant 0 : i32
    %c0_i32_1 = arith.constant 0 : i32
    return %c0_i32, %c0_i32_0 : i32, i32
  }
  func.func @transform_10(%arg0: i32) -> (i32, i32, i32) {
    %c0_i32 = arith.constant 0 : i32
    %c0_i32_0 = arith.constant 0 : i32
    %c0_i32_1 = arith.constant 0 : i32
    return %arg0, %c0_i32, %c0_i32_0 : i32, i32, i32
  }
}

</mosaic_0001>

<bundles_post_ra>
// kernel: tpu_custom_call.1
= control target key start
LH: loop header
LB: loop body
LE: loop exit
PB: predicated region body
PF: predicated region fallthrough
CT: control target
= control target key end

     0   :  { %15 = vsyncpa [#allocation3], 0  ;;  %s1496_s0 = inlined_call_operand.vmem [shape: f32[1,512], index: 0, kind: input, shape index: {}]   ;;  %s1497_s1 = inlined_call_operand.vmem [shape: f32[4,512], index: 1, kind: input, shape index: {}]   ;;  %s1498_s2 = inlined_call_operand.vmem [shape: f32[4,512], index: 2, kind: input, shape index: {}]   ;;  %s1499_s3 = inlined_call_operand.vmem [shape: f32[4,512], index: 3, kind: input, shape index: {}]   ;;  %s1500_s4 = inlined_call_operand.vmem [shape: f32[32,4], index: 4, kind: input, shape index: {}]   ;;  %s1501_s5 = inlined_call_operand.vmem [shape: f32[32,4], index: 5, kind: input, shape index: {}]   ;;  %s1502_s6 = inlined_call_operand.vmem [shape: f32[32,1], index: 6, kind: input, shape index: {}]   ;;  %s1503_s7 = inlined_call_operand.vmem [shape: f32[32,1], index: 7, kind: input, shape index: {}]   ;;  %s1504_s8 = inlined_call_operand.vmem [shape: f32[4,32], index: 8, kind: input, shape index: {}]   ;;  %s1505_s9 = inlined_call_operand.vmem [shape: f32[4,1], index: 9, kind: input, shape index: {}]   ;;  %s1506_s10 = inlined_call_operand.hbm [shape: f32[2,1,128], index: 10, kind: output, shape index: {}]  }
   0x1   :  { %17 = vsyncpa [#allocation3 + $0x1], 0  ;;  %s1273_s13 = smov 0   ;;  %s1275_s14 = smov 0  }
   0x2   :  { %s1277_s15 = smov 0   ;;  %s1279_s16 = smov 0  }
   0x3 LB: > { %1511 = sst [smem:[#allocation5_spill]] %s1209_s15  ;;  %s1294_s17 = sadd.s32 4294967295, %s1213_s16   ;;  %s1213_s16 = sphi %s1279_s16, %s1518_s16   ;;  %s1209_s15 = sphi %s1277_s15, %s1520_s15   ;;  %s1205_s14 = sphi %s1275_s14, %s1522_s14   ;;  %s1201_s13 = sphi %s1273_s13, %s1521_s13  }
   0x4   : > { %s1020_s18 = sadd.s32 4294967294, %s1213_s16   ;;  %s1298_s19 = sadd.s32 1, %s1213_s16  }
   0x5   : > { %1512 = sst [smem:[#allocation6_spill]] %s1298_s19  ;;  %s260_s20 = sadd.s32 1, %s1209_s15 }
   0x6   : > { %s257_s21 = ssub.s32 %s1213_s16, %s1298_s19  ;;  %p270_p0 = scmp.ne.s32.totalorder %s1209_s15, %s1205_s14 }
   0x7   : > { %p258_p1 = scmp.eq.s32.totalorder %s257_s21, 0  ;;  %p271_p2 = scmp.eq.s32.totalorder %s1294_s17, 1 }
   0x8   : > { %p276_p3 = scmp.ne.s32.totalorder %s1205_s14, %s1201_s13  ;;  %p277_p4 = scmp.eq.s32.totalorder %s1020_s18, 1 }
   0x9   : > { %s1309_s22 = scalar_select %p258_p1, %s1209_s15, %s260_s20  }
   0xa   : > { %p1311_p5 = por %p271_p2, %p270_p0  ;;  %p1315_p6 = por %p277_p4, %p276_p3 }
   0xb   : > { %1513 = sst [smem:[#allocation7_spill]] %s1309_s22  ;;  %p1023_p7 = scmp.ge.s32.totalorder %s1213_s16, 1 }
   0xc   : > { %s1515_s24 = scalar_select %p1315_p6, 1, 0 }
   0xd   : > { %p348_p8 = scmp.lt.s32.totalorder %s1213_s16, 3 }
   0xe   : > { %1516 = sst [smem:[#allocation8_spill]] %s1515_s24 }
   0xf   : > { %p349_p9 = pnand %p1023_p7, %p348_p8 }
  0x10   : > { %s1024_s25 = sshll.u32 (!%p349_p9), %s1294_s17, 1  ;;  %v427_v0 = vlaneseq (!%p349_p9)  ;;  %v1215_v1 = vmov (!%p349_p9), 0.0   ;;  %v1216_v3 = vmov (!%p349_p9), 0   ;;  %v685_v4 = vld [vmem:[%s1502_s6] sm:$0xff] (!%p349_p9)  ;;  %v686_v8 = vld [vmem:[%s1502_s6 + $0x8] sm:$0xff] (!%p349_p9)  ;;  %vm484_vm0 = vcmask (!%p349_p9), 1043456  }
  0x11   : > { %352 = sbr.rel (%p349_p9) target bundleno = 748 (0x2ec), region = 60  ;;  %p400_p10 = scmp.lt.s32.totalorder (!%p349_p9), %s1024_s25, 3  ;;  %553 = vmatprep.mubr.f32.mxu1 (!%p349_p9), %v1215_v1  ;;  %660 = vmatprep.mubr.f32.mxu0 (!%p349_p9), %v1215_v1  ;;  %v717_v5 = vld [vmem:[%s1503_s7] sm:$0xff] (!%p349_p9)  ;;  %v718_v9 = vld [vmem:[%s1503_s7 + $0x8] sm:$0xff] (!%p349_p9)  ;;  %v687_v23 = vld [vmem:[%s1502_s6 + $0x10] sm:$0xff] (!%p349_p9)  ;;  %vm471_vm1 = vcmask (!%p349_p9), 31744  }
  0x12   : > { %v428_v2 = vshrl.u32 (!%p349_p9), %v427_v0, 7  ;;  %1114 = vset.pattern.permute.xlu0 (!%p349_p9), %v1216_v3  ;;  %1115 = vset.pattern.permute.xlu1 (!%p349_p9), %v1216_v3  ;;  %v465_v25 = vld [vmem:[%s1501_s5] sm:$0xff] (!%p349_p9)  ;;  %v688_v26 = vld [vmem:[%s1502_s6 + $0x18] sm:$0xff] (!%p349_p9)  ;;  %v719_v31 = vld [vmem:[%s1503_s7 + $0x10] sm:$0xff] (!%p349_p9)  ;;  %vm820_vm2 = vcmask (!%p349_p9), 261120   ;;  %s397_s11 = sand.u32 (!%p349_p9), 1, %s1205_s14  }
  0x13   : > { %691 = vperm.xlu0 (!%p349_p9), %1114, %v685_v4   ;;  %723 = vperm.xlu1 (!%p349_p9), %1115, %v717_v5   ;;  %v461_v32 = vld [vmem:[%s1500_s4] sm:$0xff] (!%p349_p9)  ;;  %v466_v33 = vld [vmem:[%s1501_s5 + $0x8] sm:$0xff] (!%p349_p9)  ;;  %v720_v34 = vld [vmem:[%s1503_s7 + $0x18] sm:$0xff] (!%p349_p9)  ;;  %s1052_s19 = sshll.u32 (!%p349_p9), %s1294_s17, 4  ;;  %s920_s20 = scalar_lea.sflag (!%p349_p9), [#allocation3], %s397_s11 }
  0x14   : > { %v433_v6 = vsub.s32 (!%p349_p9), 1, %v428_v2  ;;  %v429_v7 = vsub.s32 (!%p349_p9), 0, %v428_v2  ;;  %v814_v35 = vld [vmem:[%s1505_s9] sm:$0xf] (!%p349_p9)  ;;  %v462_v36 = vld [vmem:[%s1500_s4 + $0x8] sm:$0xff] (!%p349_p9)  ;;  %v467_v37 = vld [vmem:[%s1501_s5 + $0x10] sm:$0xff] (!%p349_p9) }
  0x15   : > { %v463_v38 = vld [vmem:[%s1500_s4 + $0x10] sm:$0xff] (!%p349_p9)  ;;  %v468_v39 = vld [vmem:[%s1501_s5 + $0x18] sm:$0xff] (!%p349_p9)  ;;  %s1217_s17 = smov (!%p349_p9), [#allocation2]  }
  0x16   : > { %v464_v40 = vld [vmem:[%s1500_s4 + $0x18] sm:$0xff] (!%p349_p9)  ;;  %s1155_s26 = sshll.u32 (!%p349_p9), %s1217_s17, 4  ;;  %s1156_s26 = int_to_ptr.vmem [resolvable:$false] %s1155_s26 }
  0x17   : > { %696 = vperm.xlu0 (!%p349_p9), %1114, %v686_v8   ;;  %728 = vperm.xlu1 (!%p349_p9), %1115, %v718_v9   ;;  %s1157_s27 = scalar_lea.vmem (!%p349_p9), %s1156_s26, 32 }
  0x18   : > { %s1524_s25 = smov (!%p400_p10, %s1024_s25), 3 }
  0x19   : > { %s402_s12 = scalar_lea.vmem %s1496_s0, %s1524_s25  ;;  %s1026_s18 = sshll.u32 %s1524_s25, 2 }
  0x1a   : > { %s408_s29 = scalar_lea.vmem %s1497_s1, %s1026_s18  ;;  %s414_s24 = scalar_lea.vmem %s1498_s2, %s1026_s18  ;;  %v422_v10 = vld [vmem:[%s402_s12] sm:$0x3] }
  0x1b   : > { %s420_s25 = scalar_lea.vmem %s1499_s3, %s1026_s18  ;;  %v1348_v11 = vld [vmem:[%s408_s29] sm:$0xff]  ;;  %v1352_v13 = vrot.slane %v422_v10, %v433_v6  ;;  %v442_v14 = vsub.f32 1.0, %v422_v10  ;;  %v1354_v15 = vrot.slane %v422_v10, %v429_v7  ;;  %701 = vperm.xlu0 %1114, %v687_v23   ;;  %706 = vperm.xlu1 %1115, %v688_v26   ;;  %s1456_s18 = scalar_lea.hbm %s1506_s10, %s1052_s19 }
  0x1c   : > { %v1350_v12 = vld [vmem:[%s414_s24] sm:$0xff]  ;;  %v438_v17 = vcombine.high %v1348_v11, %v1348_v11 }
  0x1d   : > { %v425_v16 = vld [vmem:[%s420_s25] sm:$0xff]  ;;  %v455_v18 = vcombine.high %v1350_v12, %v1350_v12  ;;  %v451_v20 = vrot.slane %v442_v14, %v433_v6  ;;  %v440_v21 = vmul.f32 %v1354_v15, %v1348_v11  ;;  %v447_v22 = vrot.slane %v442_v14, %v429_v7  ;;  %s398_s25 = scalar_lea.vmem [#allocation2], %s397_s11 }
  0x1e   : > { %v470_v19 = vcombine.high %v425_v16, %v425_v16  ;;  %v441_v24 = vmul.f32 %v438_v17, %v1352_v13  ;;  %s932_s15 = sshll.u32 %s398_s25, 4  ;;  %s1451_s15 = int_to_ptr.vmem [resolvable:$true] %s932_s15 }
  0x1f   : > { %v458_v27 = vmul.f32 %v455_v18, %v451_v20  ;;  %v457_v28 = vmul.f32 %v447_v22, %v1350_v12  ;;  %733 = vperm.xlu0 %1114, %v719_v31   ;;  %738 = vperm.xlu1 %1115, %v720_v34   ;;  %s1151_s21 = scalar_lea.vmem %s1451_s15, 16  ;;  %p1158_p0 = scmp.lt.s32.totalorder %s1451_s15, %s1156_s26 }
  0x20   : > { %1031 = vmatprep.subr.msk.mxu1 %vm484_vm0, %v470_v19  ;;  %p1152_p11 = scmp.ne.s32.totalorder %s1451_s15, %s1151_s21  ;;  %p1159_p1 = scmp.lt.s32.totalorder %s1157_s27, %s1151_s21 }
  0x21   : > { %1032 = vmatpush1.msk.msra.mxu1 %vm484_vm0, %v425_v16  ;;  %v460_v29 = vadd.f32 %v458_v27, %v441_v24  ;;  %v459_v30 = vadd.f32 %v457_v28, %v440_v21 }
  0x22   : > { %1033 = vmatmul.mubr.msk.f32.vlgmr.msra.gmra.mrb[0].mxu1 %vm471_vm1, %v465_v25  ;;  %p1153_p12 = pnand %p1152_p11, %p1311_p5  ;;  %p1160_p2 = por %p1159_p1, %p1158_p0 }
  0x23   : > { %559 = vmatprep.mubr.f32.mxu1 %v1215_v1  ;;  %1037 = vmatprep.subr.msk.mxu0 %vm484_vm0, %v460_v29 }
  0x24   : > { %1038 = vmatpush1.msk.msra.mxu0 %vm484_vm0, %v459_v30  ;;  %817 = vperm.xlu0 %1114, %v814_v35   ;;  %p1154_p13 = pneg %p1153_p12 }
  0x25   : > { %1039 = vmatmul.mubr.msk.f32.vlgmr.msra.gmra.mrb[0].mxu0 %vm471_vm1, %v461_v32 }
  0x26   : > { %1034 = vmatmul.mubr.msk.f32.gmra.mrb[2].mxu1 %vm471_vm1, %v466_v33  ;;  %666 = vmatprep.mubr.f32.mxu0 %v1215_v1  ;;  %p1161_p3 = pnand %p1160_p2, %p1154_p13 }
  0x27   : > { %565 = vmatprep.mubr.f32.mxu1 %v1215_v1 }
  0x29   : > { %1040 = vmatmul.mubr.msk.f32.gmra.mrb[2].mxu0 %vm471_vm1, %v462_v36 }
  0x2a   : > { %1035 = vmatmul.mubr.msk.f32.gmra.mrb[4].mxu1 %vm471_vm1, %v467_v37  ;;  %672 = vmatprep.mubr.f32.mxu0 %v1215_v1 }
  0x2b   : > { %571 = vmatprep.mubr.f32.mxu1 %v1215_v1 }
  0x2d   : > { %1041 = vmatmul.mubr.msk.f32.gmra.mrb[4].mxu0 %vm471_vm1, %v463_v38 }
  0x2e   : > { %1036 = vmatmul.mubr.msk.f32.gmra.mrb[6].mxu1 %vm471_vm1, %v468_v39  ;;  %678 = vmatprep.mubr.f32.mxu0 %v1215_v1 }
  0x2f   : > { %888 = vmatprep.mubr.f32.mxu1 %v1215_v1 }
  0x31   : > { %1042 = vmatmul.mubr.msk.f32.gmra.mrb[6].mxu0 %vm471_vm1, %v464_v40 }
  0x92   : > { %v692_v41 = vpop.permute.xlu0 %691  ;;  %v724_v42 = vpop.permute.xlu1 %723 }
  0x93   : > { %v741_v49 = vmul.f32 %v724_v42, %v1354_v15  ;;  %v742_v53 = vmul.f32 %v724_v42, %v1352_v13 }
  0x96   : > { %v697_v44 = vpop.permute.xlu0 %696  ;;  %v729_v46 = vpop.permute.xlu1 %728 }
  0x97   : > { %v743_v3 = vmul.f32 %v729_v46, %v1354_v15  ;;  %v744_v6 = vmul.f32 %v729_v46, %v1352_v13 }
  0x9a   : > { %v702_v55 = vpop.permute.xlu0 %701  ;;  %v707_v0 = vpop.permute.xlu1 %706 }
  0x9e   : > { %v734_v19 = vpop.permute.xlu0 %733  ;;  %v739_v26 = vpop.permute.xlu1 %738 }
  0x9f   : > { %v745_v22 = vmul.f32 %v734_v19, %v1354_v15  ;;  %v746_v25 = vmul.f32 %v734_v19, %v1352_v13  ;;  %v747_v35 = vmul.f32 %v739_v26, %v1354_v15  ;;  %v748_v38 = vmul.f32 %v739_v26, %v1352_v13 }
  0xf5   : > { %v555_v43 = vpop.f32.mrb[0].mxu1 }
  0xf6   : > { %v557_v45 = vpop.f32.mrb[1].mxu1 }
  0xf8   : > { %v662_v47 = vpop.f32.mrb[0].mxu0 }
  0xf9   : > { %v561_v48 = vpop.f32.mrb[2].mxu1  ;;  %v663_v50 = vadd.f32 %v662_v47, %v555_v43  ;;  %v664_v51 = vpop.f32.mrb[1].mxu0 }
  0xfa   : > { %v563_v52 = vpop.f32.mrb[3].mxu1  ;;  %v665_v54 = vadd.f32 %v664_v51, %v557_v45 }
  0xfb   : > { %v709_v56 = vadd.f32 %v692_v41, %v663_v50 }
  0xfc   : > { %v710_v57 = vadd.f32 %v692_v41, %v665_v54  ;;  %v668_v58 = vpop.f32.mrb[2].mxu0 }
  0xfd   : > { %v567_v59 = vpop.f32.mrb[4].mxu1  ;;  %v1424_v60 = vadd.f32 %v741_v49, %v709_v56  ;;  %v669_v61 = vadd.f32 %v668_v58, %v561_v48  ;;  %v670_v62 = vpop.f32.mrb[3].mxu0 }
  0xfe   : > { %v569_v63 = vpop.f32.mrb[5].mxu1  ;;  %v1426_v1 = vadd.f32 %v742_v53, %v710_v57  ;;  %v671_v2 = vadd.f32 %v670_v62, %v563_v52 }
  0xff   : > { %v1043_v4 = vmul.f32 -1.442695, %v1424_v60  ;;  %v711_v5 = vadd.f32 %v697_v44, %v669_v61 }
 0x100   : > { %v1044_v7 = vmul.f32 -1.442695, %v1426_v1  ;;  %v712_v8 = vadd.f32 %v697_v44, %v671_v2  ;;  %v674_v9 = vpop.f32.mrb[4].mxu0 }
 0x101   : > { %v573_v10 = vpop.f32.mrb[6].mxu1  ;;  %1119 = vpow2.f32 %v1043_v4  ;;  %v1432_v14 = vadd.f32 %v743_v3, %v711_v5  ;;  %v675_v16 = vadd.f32 %v674_v9, %v567_v59  ;;  %v676_v17 = vpop.f32.mrb[5].mxu0 }
 0x102   : > { %v575_v18 = vpop.f32.mrb[7].mxu1  ;;  %1121 = vpow2.f32 %v1044_v7  ;;  %v752_v20 = vadd.f32 %v744_v6, %v712_v8  ;;  %v677_v21 = vadd.f32 %v676_v17, %v569_v63 }
 0x103   : > { %v1045_v23 = vmul.f32 -1.442695, %v1432_v14  ;;  %v713_v24 = vadd.f32 %v702_v55, %v675_v16 }
 0x104   : > { %v1046_v27 = vmul.f32 -1.442695, %v752_v20  ;;  %v714_v28 = vadd.f32 %v702_v55, %v677_v21  ;;  %v680_v29 = vpop.f32.mrb[6].mxu0 }
 0x105   : > { %1123 = vpow2.f32 %v1045_v23  ;;  %v753_v30 = vadd.f32 %v745_v22, %v713_v24  ;;  %v681_v31 = vadd.f32 %v680_v29, %v573_v10  ;;  %v682_v32 = vpop.f32.mrb[7].mxu0 }
 0x106   : > { %1125 = vpow2.f32 %v1046_v27  ;;  %v754_v33 = vadd.f32 %v746_v25, %v714_v28  ;;  %v683_v34 = vadd.f32 %v682_v32, %v575_v18  ;;  %v895_v25 = vsub.f32 %v1348_v11, %v1350_v12 }
 0x107   : > { %v1047_v36 = vmul.f32 -1.442695, %v753_v30  ;;  %v715_v37 = vadd.f32 %v707_v0, %v681_v31 }
 0x108   : > { %v1048_v39 = vmul.f32 -1.442695, %v754_v33  ;;  %v716_v40 = vadd.f32 %v707_v0, %v683_v34 }
 0x109   : > { %1127 = vpow2.f32 %v1047_v36  ;;  %v755_v41 = vadd.f32 %v747_v35, %v715_v37 }
 0x10a   : > { %1129 = vpow2.f32 %v1048_v39  ;;  %v756_v42 = vadd.f32 %v748_v38, %v716_v40 }
 0x10b   : > { %v1120_v43 = vpop.eup %1119  ;;  %v1049_v44 = vmul.f32 -1.442695, %v755_v41 }
 0x10c   : > { %v1122_v45 = vpop.eup %1121  ;;  %v781_v46 = vadd.f32 1.0, %v1120_v43  ;;  %v1050_v47 = vmul.f32 -1.442695, %v756_v42 }
 0x10d   : > { %v782_v48 = vadd.f32 1.0, %v1122_v45  ;;  %1131 = vpow2.f32 %v1049_v44 }
 0x10e   : > { %1133 = vrcp.f32 %v781_v46 }
 0x10f   : > { %v1124_v49 = vpop.eup %1123  ;;  %1135 = vpow2.f32 %v1050_v47 }
 0x110   : > { %v1126_v15 = vpop.eup %1125  ;;  %v783_v50 = vadd.f32 1.0, %v1124_v49  ;;  %1137 = vrcp.f32 %v782_v48 }
 0x111   : > { %v784_v13 = vadd.f32 1.0, %v1126_v15 }
 0x112   : > { %1139 = vrcp.f32 %v783_v50 }
 0x113   : > { %v1128_v51 = vpop.eup %1127  ;;  %1141 = vrcp.f32 %v784_v13 }
 0x114   : > { %v1130_v52 = vpop.eup %1129  ;;  %v785_v53 = vadd.f32 1.0, %v1128_v51 }
 0x115   : > { %v786_v55 = vadd.f32 1.0, %v1130_v52 }
 0x116   : > { %1143 = vrcp.f32 %v785_v53 }
 0x117   : > { %v1132_v54 = vpop.eup %1131 }
 0x118   : > { %v787_v56 = vadd.f32 1.0, %v1132_v54  ;;  %v1134_v57 = vpop.eup %1133 }
 0x119   : > { %v1136_v58 = vpop.eup %1135  ;;  %v805_v0 = vmul.f32 %v1134_v57, %v1424_v60 }
 0x11a   : > { %1145 = vrcp.f32 %v787_v56  ;;  %v1138_v59 = vpop.eup %1137  ;;  %v788_v61 = vadd.f32 1.0, %v1136_v58 }
 0x11b   : > { %1147 = vrcp.f32 %v786_v55  ;;  %v806_v3 = vmul.f32 %v1138_v59, %v1426_v1  ;;  %v813_v1 = vld [vmem:[%s1504_s8] sm:$0xf] }
 0x11c   : > { %v1140_v62 = vpop.eup %1139  ;;  %1149 = vrcp.f32 %v788_v61 }
 0x11d   : > { %v1142_v63 = vpop.eup %1141  ;;  %v807_v2 = vmul.f32 %v1140_v62, %v1432_v14  ;;  %v818_v14 = vpop.permute.xlu0 %817 }
 0x11e   : > { %v808_v4 = vmul.f32 %v1142_v63, %v752_v20 }
 0x11f   : > { %v1057_v5 = vpack.c.bf16 %v807_v2, %v805_v0 }
 0x120   : > { %v1055_v6 = vpack.c.bf16 %v808_v4, %v806_v3  ;;  %v1144_v7 = vpop.eup %1143 }
 0x121   : > { %v809_v10 = vmul.f32 %v1144_v7, %v753_v30 }
 0x122   : > { %1056 = vmatprep.subr.bf16.mxu1 %v1055_v6 }
 0x123   : > { %1058 = vmatpush1.bf16.msra.mxu1 %v1057_v5 }
 0x124   : > { %v1146_v8 = vpop.eup %1145 }
 0x125   : > { %v1148_v9 = vpop.eup %1147  ;;  %v811_v16 = vmul.f32 %v1146_v8, %v755_v41 }
 0x126   : > { %v1150_v17 = vpop.eup %1149  ;;  %v810_v19 = vmul.f32 %v1148_v9, %v754_v33 }
 0x127   : > { %v1061_v18 = vpack.c.bf16 %v811_v16, %v809_v10  ;;  %v812_v21 = vmul.f32 %v1150_v17, %v756_v42 }
 0x129   : > { %v1059_v60 = vpack.c.bf16 %v812_v21, %v810_v19 }
 0x12b   : > { %1060 = vmatprep.subr.bf16.mxu1 %v1059_v60 }
 0x12c   : > { %1062 = vmatpush1.bf16.msra.mxu1 %v1061_v18 }
 0x12f   : > { %1051 = vmatmul.mubr.msk.f32.vlgmr.msra.gmra.mrb[8].mxu1 %vm820_vm2, %v813_v1 }
 0x202   : > { %v890_v20 = vpop.f32.mrb[8].mxu1 }
 0x203   : > { %v891_v22 = vadd.f32 %v890_v20, %v818_v14  ;;  %v892_v23 = vpop.f32.mrb[9].mxu1 }
 0x204   : > { %v893_v24 = vadd.f32 %v892_v23, %v818_v14 }
 0x206   : > { %v898_v26 = vcombine.low %v891_v22, %v893_v24 }
 0x208   : > { %v900_v27 = vsub.f32 %v895_v25, %v898_v26 }
 0x20a   : > { %v901_v28 = vmul.f32 %v900_v27, %v900_v27 }
 0x20c   : > { %v903_v29 = vcombine.high %v901_v28, %v901_v28  ;;  %v905_v30 = vsel %vm484_vm0, %v901_v28, 0.0 }
 0x20e   : > { %v906_v31 = vsel %vm484_vm0, %v903_v29, 0.0 }
 0x20f   : > { %v907_v32 = vadd.f32 %v906_v31, %v905_v30 }
 0x211   : > { %908 = vadd.xlane.f32.xlu1 %v907_v32 }
 0x29e   : > { %v909_v33 = vpop.xlane.xlu1 %908 }
 0x29f   : > { %v910_v34 = vrot.slane %v909_v33, 4 }
 0x2a1   : > { %v911_v35 = vadd.f32 %v910_v34, %v909_v33 }
 0x2a3   : > { %v912_v36 = vrot.slane %v911_v35, 2 }
 0x2a5   : > { %v913_v37 = vadd.f32 %v912_v36, %v911_v35 }
 0x2a7   : > { %v914_v38 = vrot.slane %v913_v37, 1 }
 0x2a9   : > { %v915_v11 = vadd.f32 %v914_v38, %v913_v37 }
 0x2ab   : > { %1071 = vpush %v915_v11 }
 0x2dc   : > { %s1072_s22 = spop %1071 }
 0x2dd   : > { %v917_v12 = vstv %s1072_s22 }
 0x2de   : > { %918 = vst [vmem:[%s398_s25] sm:$0x1] %v917_v12 }
 0x2df   : > { %1164 = shalt.err (!%p1161_p3)
}
 0x2e0   : > { %s1165_s28 = scalar_lea.hbm %s1456_s18, 16  ;;  %s1169_s11 = scalar_lea.hbm %s1506_s10, 32 }
 0x2e1   : > { %p1166_p4 = scmp.ne.s32.totalorder %s1456_s18, %s1165_s28  ;;  %p1170_p9 = scmp.lt.u32.totalorder %s1456_s18, %s1506_s10 }
 0x2e2   : > { %p1171_p10 = scmp.lt.u32.totalorder %s1169_s11, %s1165_s28  ;;  %p1173_p12 = scmp.lt.u32.totalorder %s1165_s28, %s1456_s18 }
 0x2e3   : > { %p1167_p7 = pnand %p1166_p4, %p1311_p5 }
 0x2e4   : > { %p1172_p11 = por %p1171_p10, %p1170_p9 }
 0x2e5   : > { %p1168_p8 = pneg %p1167_p7 }
 0x2e6   : > { %p1174_p13 = por %p1173_p12, %p1172_p11 }
 0x2e8   : > { %p1175_p0 = pnand %p1174_p13, %p1168_p8 }
 0x2ea   : > { %1178 = shalt.err (!%p1175_p0)
}
 0x2eb   : > { %1073 = dma.vmem_to_hbm [thread:$0]  (%p1311_p5), %s1451_s15, 16, %s1456_s18, %s920_s20  }
 0x2ec PF: > { %p1079_p1 = scmp.ge.s32.totalorder %s1213_s16, 2  ;;  %s944_s24 = sand.u32 1, %s1201_s13  }
 0x2ed   : > { %s945_s12 = scalar_lea.sflag [#allocation3], %s944_s24 }
 0x2ee   : > { %p1076_p2 = pnand %p1079_p1, %p1315_p6 }
 0x2f0   : > { %1196 = dma.done.wait (!%p1076_p2), %s945_s12, 16  }
 0x2f1   : > { %1198 = vsyncadd (!%p1076_p2), %s945_s12, 4294967280  ;;  %s1518_s16 = sld [smem:[#allocation6_spill]]  ;;  %s1519_s21 = sld [smem:[#allocation5_spill]] }
 0x2f2   : > { %s1520_s15 = sld [smem:[#allocation7_spill]]  ;;  %s1521_s13 = smov %s1205_s14 }
 0x2f7   : > { %p20_p3 = scmp.ge.s32.totalorder %s1518_s16, 4   ;;  %s1522_s14 = smov %s1519_s21 }
 0x2f9   :  { %22 = sbr.rel (!%p20_p3) target bundleno = 3 (0x3), region = 104 }
 0x300   :  { %949 = vsyncpa [#allocation3], 1 }
 0x301   :  { %951 = vsyncpa [#allocation3 + $0x1], 1 }

</bundles_post_ra>
